<compile_context>
chip_gen: v6e
topology: v6e:2x2x1
jax: 0.10.0
libtpu: 0.0.40
codegen_flags: <defaults>
</compile_context>

<pallas_src>
import functools
import math

import jax
import jax.numpy as jnp
from jax.experimental import pallas as pl
from jax.experimental.pallas import tpu as pltpu


# ---------------------------------------------------------------------------
# Kernel: one grid step = (one batch element, one encoder layer)
# ---------------------------------------------------------------------------

def _transformer_layer_kernel(
    src_ref, enc_w_ref, enc_b_ref,
    wqkv_ref, bqkv_ref, wo_ref, bo_ref,
    w1_ref, b1_ref, w2_ref, b2_ref,
    ln1g_ref, ln1b_ref, ln2g_ref, ln2b_ref,
    dec_w_ref, dec_b_ref,
    o_ref,
    x_scratch,
    *, nhead, eps):
    f32 = jnp.float32
    bf16 = jnp.bfloat16
    l = pl.program_id(1)
    nlayers = pl.num_programs(1)

    def mm(x, w, b):
        # bf16 MXU operands, f32 accumulation.
        return jnp.dot(x.astype(bf16), w, preferred_element_type=f32) + b

    def layernorm(h, g, b):
        mean = jnp.mean(h, axis=-1, keepdims=True)
        cen = h - mean
        var = jnp.mean(cen * cen, axis=-1, keepdims=True)
        return cen * jax.lax.rsqrt(var + eps) * g + b

    # encoder1 only on the first layer step of this batch element.
    @pl.when(l == 0)
    def _():
        x_scratch[...] = mm(src_ref[...], enc_w_ref[...], enc_b_ref[...])

    x = x_scratch[...]                               # (S, D) f32
    S, D = x.shape
    H = nhead
    dk = D // H

    # ----- multi-head self-attention (QKV fused, heads batched) -----
    qkv = mm(x, wqkv_ref[...], bqkv_ref[...])        # (S, 3D); scale folded in
    q = qkv[:, 0 * D:1 * D].reshape(S, H, dk).swapaxes(0, 1).astype(bf16)
    k = qkv[:, 1 * D:2 * D].reshape(S, H, dk).swapaxes(0, 1).astype(bf16)
    v = qkv[:, 2 * D:3 * D].reshape(S, H, dk).swapaxes(0, 1).astype(bf16)

    s = jnp.einsum('hqd,hkd->hqk', q, k,
                   preferred_element_type=f32)       # (H, S, S)
    s = s - jnp.max(s, axis=-1, keepdims=True)
    p = jnp.exp(s)
    # approx reciprocal (EUP slot); tiny deviation from exact softmax.
    p = p * pl.reciprocal(jnp.sum(p, axis=-1, keepdims=True), approx=True)
    ctx = jnp.einsum('hqk,hkd->hqd', p.astype(bf16), v,
                     preferred_element_type=f32)     # (H, S, dk)
    ctx = ctx.swapaxes(0, 1).reshape(S, D)           # merge heads -> (S, D)
    attn = mm(ctx, wo_ref[...], bo_ref[...])         # single (S,D)@(D,D)
    x = layernorm(x + attn, ln1g_ref[...], ln1b_ref[...])   # post-norm

    # ----- feed-forward (relu) -----
    ff = jnp.maximum(mm(x, w1_ref[...], b1_ref[...]), 0.0)
    ff = mm(ff, w2_ref[...], b2_ref[...])
    x = layernorm(x + ff, ln2g_ref[...], ln2b_ref[...])
    x_scratch[...] = x

    # decoder on the last layer step; output slab is lane-padded to 128.
    @pl.when(l == nlayers - 1)
    def _():
        o_ref[...] = mm(x, dec_w_ref[...], dec_b_ref[...]).astype(o_ref.dtype)


# ---------------------------------------------------------------------------
# Wrapper: one-time weight packing + single pallas_call over a (B, L) grid
# ---------------------------------------------------------------------------

def basic_transformer_forward(src, params, nhead, eps=1e-5):
    # src: (S, B, dinp) -- PyTorch's default seq-first layout.
    S, B, dinp = src.shape
    L = len(params["layers"])
    dmodel = params["enc1_w"].shape[0]
    dhid = params["layers"][0]["lin1_w"].shape[0]
    dout = params["dec_w"].shape[0]
    dk = dmodel // nhead
    scale = 1.0 / math.sqrt(dk)
    dout_pad = ((dout + 127) // 128) * 128
    wt = jnp.bfloat16

    def stack(name):
        return jnp.stack([lp[name] for lp in params["layers"]])

    # torch stores Linear weights as (out, in); kernel computes x @ W, so
    # everything is transposed once here (outside the hot path).
    in_w = stack("in_proj_w")                        # (L, 3D, D)
    in_b = stack("in_proj_b")                        # (L, 3D)
    # fold the 1/sqrt(dk) attention scale into Wq / bq.
    q_scale = jnp.concatenate([jnp.full((dmodel,), scale, jnp.float32),
                               jnp.ones((2 * dmodel,), jnp.float32)])
    wqkv = (in_w * q_scale[None, :, None]).transpose(0, 2, 1).astype(wt)
    bqkv = (in_b * q_scale[None, :]).reshape(L, 1, 3 * dmodel)

    wo = stack("out_proj_w").transpose(0, 2, 1).astype(wt)   # (L, D, D)
    bo = stack("out_proj_b").reshape(L, 1, dmodel)
    w1 = stack("lin1_w").transpose(0, 2, 1).astype(wt)       # (L, D, dhid)
    b1 = stack("lin1_b").reshape(L, 1, dhid)
    w2 = stack("lin2_w").transpose(0, 2, 1).astype(wt)       # (L, dhid, D)
    b2 = stack("lin2_b").reshape(L, 1, dmodel)
    ln1g = stack("ln1_g").reshape(L, 1, dmodel)
    ln1b = stack("ln1_b").reshape(L, 1, dmodel)
    ln2g = stack("ln2_g").reshape(L, 1, dmodel)
    ln2b = stack("ln2_b").reshape(L, 1, dmodel)
    enc_w = params["enc1_w"].T.astype(wt)                    # (dinp, D)
    enc_b = params["enc1_b"].reshape(1, dmodel)
    # decoder weight/bias lane-padded to a multiple of 128 (zero columns).
    dec_w = jnp.zeros((dmodel, dout_pad), jnp.float32)
    dec_w = dec_w.at[:, :dout].set(params["dec_w"].T).astype(wt)
    dec_b = jnp.zeros((1, dout_pad), jnp.float32)
    dec_b = dec_b.at[:, :dout].set(params["dec_b"].reshape(1, dout))

    src_b = src.transpose(1, 0, 2)                   # (B, S, dinp) batch-major

    inputs = (src_b, enc_w, enc_b, wqkv, bqkv, wo, bo, w1, b1, w2, b2,
              ln1g, ln1b, ln2g, ln2b, dec_w, dec_b)

    def const_spec(a):
        n = a.ndim
        return pl.BlockSpec(a.shape, lambda b, l, n=n: (0,) * n)

    def layer_spec(a):
        # leading L axis streamed per layer grid step (squeezed in the kernel)
        nrest = a.ndim - 1
        return pl.BlockSpec((None,) + a.shape[1:],
                            lambda b, l, nrest=nrest: (l,) + (0,) * nrest)

    in_specs = [
        pl.BlockSpec((None, S, dinp), lambda b, l: (b, 0, 0)),   # src slab
        const_spec(enc_w), const_spec(enc_b),
        layer_spec(wqkv), layer_spec(bqkv),
        layer_spec(wo), layer_spec(bo),
        layer_spec(w1), layer_spec(b1),
        layer_spec(w2), layer_spec(b2),
        layer_spec(ln1g), layer_spec(ln1b),
        layer_spec(ln2g), layer_spec(ln2b),
        const_spec(dec_w), const_spec(dec_b),
    ]
    out_spec = pl.BlockSpec((None, S, dout_pad), lambda b, l: (b, 0, 0))

    out = pl.pallas_call(
        functools.partial(_transformer_layer_kernel, nhead=nhead, eps=eps),
        out_shape=jax.ShapeDtypeStruct((B, S, dout_pad), src.dtype),
        grid=(B, L),
        in_specs=in_specs,
        out_specs=out_spec,
        scratch_shapes=[pltpu.VMEM((S, dmodel), jnp.float32)],
        compiler_params=pltpu.CompilerParams(
            dimension_semantics=("parallel", "arbitrary")),
    )(*inputs)

    # strip lane padding, back to PyTorch (S, B, dout) layout.
    return out[:, :, :dout].transpose(1, 0, 2)


# ---------------------------------------------------------------------------
# Deterministic parameter construction
# ---------------------------------------------------------------------------

def make_params(key, dinp, dmodel, dhid, dout, nlayers):
    ks = iter(jax.random.split(key, 4 + 8 * nlayers))

    def w(k, shape, scale=0.05):
        return (scale * jax.random.normal(k, shape)).astype(jnp.float32)

    params = {
        "enc1_w": w(next(ks), (dmodel, dinp)),
        "enc1_b": jnp.zeros((dmodel,), jnp.float32),
        # decoder init mirrors init_weights(): bias zero, weight ~ U(-0.1, 0.1)
        "dec_w": jax.random.uniform(next(ks), (dout, dmodel),
                                    minval=-0.1, maxval=0.1).astype(jnp.float32),
        "dec_b": jnp.zeros((dout,), jnp.float32),
        "layers": [],
    }
    for _ in range(nlayers):
        params["layers"].append({
            "in_proj_w": w(next(ks), (3 * dmodel, dmodel)),
            "in_proj_b": jnp.zeros((3 * dmodel,), jnp.float32),
            "out_proj_w": w(next(ks), (dmodel, dmodel)),
            "out_proj_b": jnp.zeros((dmodel,), jnp.float32),
            "lin1_w": w(next(ks), (dhid, dmodel)),
            "lin1_b": jnp.zeros((dhid,), jnp.float32),
            "lin2_w": w(next(ks), (dmodel, dhid)),
            "lin2_b": jnp.zeros((dmodel,), jnp.float32),
            "ln1_g": jnp.ones((dmodel,), jnp.float32),
            "ln1_b": jnp.zeros((dmodel,), jnp.float32),
            "ln2_g": jnp.ones((dmodel,), jnp.float32),
            "ln2_b": jnp.zeros((dmodel,), jnp.float32),
        })
    return params


# ---------------------------------------------------------------------------

if __name__ == "__main__":
    # BasicTransformerModel(dout, dinp, nhead, dhid, nlayers), dmodel = dhid
    S, B = 8, 2
    dinp, dmodel, dhid, dout = 16, 32, 32, 8
    nhead, nlayers = 4, 2

    key = jax.random.PRNGKey(0)
    k_src, k_par = jax.random.split(key)
    src = jax.random.normal(k_src, (S, B, dinp), dtype=jnp.float32)
    params = make_params(k_par, dinp, dmodel, dhid, dout, nlayers)

    fwd = jax.jit(basic_transformer_forward, static_argnums=(2,))
    out = fwd(src, params, nhead)
    out = jax.block_until_ready(out)
    assert out.shape == (S, B, dout), out.shape
    assert bool(jnp.all(jnp.isfinite(out)))
    print("KERNEL_OK")
</pallas_src>

<mosaic_0001>
module attributes {stable_mosaic.version = 11 : i64} {
  func.func @_transformer_layer_kernel(%arg0: i32, %arg1: i32, %arg2: memref<1x8x16xf32, #tpu.memory_space<vmem>>, %arg3: memref<16x32xbf16, #tpu.memory_space<vmem>>, %arg4: memref<1x32xf32, #tpu.memory_space<vmem>>, %arg5: memref<1x32x96xbf16, #tpu.memory_space<vmem>>, %arg6: memref<1x1x96xf32, #tpu.memory_space<vmem>>, %arg7: memref<1x32x32xbf16, #tpu.memory_space<vmem>>, %arg8: memref<1x1x32xf32, #tpu.memory_space<vmem>>, %arg9: memref<1x32x32xbf16, #tpu.memory_space<vmem>>, %arg10: memref<1x1x32xf32, #tpu.memory_space<vmem>>, %arg11: memref<1x32x32xbf16, #tpu.memory_space<vmem>>, %arg12: memref<1x1x32xf32, #tpu.memory_space<vmem>>, %arg13: memref<1x1x32xf32, #tpu.memory_space<vmem>>, %arg14: memref<1x1x32xf32, #tpu.memory_space<vmem>>, %arg15: memref<1x1x32xf32, #tpu.memory_space<vmem>>, %arg16: memref<1x1x32xf32, #tpu.memory_space<vmem>>, %arg17: memref<32x128xbf16, #tpu.memory_space<vmem>>, %arg18: memref<1x128xf32, #tpu.memory_space<vmem>>, %arg19: memref<1x8x128xf32, #tpu.memory_space<vmem>>, %arg20: memref<8x32xf32, #tpu.memory_space<vmem>>) attributes {dimension_semantics = [#tpu.dimension_semantics<parallel>, #tpu.dimension_semantics<arbitrary>], iteration_bounds = array<i64: 2, 2>, scalar_prefetch = 0 : i64, scratch_operands = 1 : i64, tpu.core_type = #tpu.core_type<tc>, window_params = [{transform_indices = @transform_0, window_bounds = array<i64: 1, 8, 16>}, {pipeline_mode = #tpu.pipeline_mode<synchronous>, transform_indices = @transform_1, window_bounds = array<i64: 16, 32>}, {pipeline_mode = #tpu.pipeline_mode<synchronous>, transform_indices = @transform_2, window_bounds = array<i64: 1, 32>}, {transform_indices = @transform_3, window_bounds = array<i64: 1, 32, 96>}, {transform_indices = @transform_4, window_bounds = array<i64: 1, 1, 96>}, {transform_indices = @transform_5, window_bounds = array<i64: 1, 32, 32>}, {transform_indices = @transform_6, window_bounds = array<i64: 1, 1, 32>}, {transform_indices = @transform_7, window_bounds = array<i64: 1, 32, 32>}, {transform_indices = @transform_8, window_bounds = array<i64: 1, 1, 32>}, {transform_indices = @transform_9, window_bounds = array<i64: 1, 32, 32>}, {transform_indices = @transform_10, window_bounds = array<i64: 1, 1, 32>}, {transform_indices = @transform_11, window_bounds = array<i64: 1, 1, 32>}, {transform_indices = @transform_12, window_bounds = array<i64: 1, 1, 32>}, {transform_indices = @transform_13, window_bounds = array<i64: 1, 1, 32>}, {transform_indices = @transform_14, window_bounds = array<i64: 1, 1, 32>}, {pipeline_mode = #tpu.pipeline_mode<synchronous>, transform_indices = @transform_15, window_bounds = array<i64: 32, 128>}, {pipeline_mode = #tpu.pipeline_mode<synchronous>, transform_indices = @transform_16, window_bounds = array<i64: 1, 128>}, {transform_indices = @transform_17, window_bounds = array<i64: 1, 8, 128>}]} {
    %c0_i32 = arith.constant 0 : i32
    %0 = arith.cmpi eq, %arg1, %c0_i32 : i32
    %1 = arith.extui %0 : i1 to i32
    %c0_i32_0 = arith.constant 0 : i32
    %2 = arith.cmpi ne, %1, %c0_i32_0 : i32
    scf.if %2 {
      %c0_59 = arith.constant 0 : index
      %c0_60 = arith.constant 0 : index
      %c0_61 = arith.constant 0 : index
      %119 = vector.load %arg2[%c0_59, %c0_60, %c0_61] : memref<1x8x16xf32, #tpu.memory_space<vmem>>, vector<1x8x16xf32>
      %120 = vector.shape_cast %119 : vector<1x8x16xf32> to vector<8x16xf32>
      %c0_62 = arith.constant 0 : index
      %c0_63 = arith.constant 0 : index
      %121 = vector.load %arg3[%c0_62, %c0_63] : memref<16x32xbf16, #tpu.memory_space<vmem>>, vector<16x32xbf16>
      %c0_64 = arith.constant 0 : index
      %c0_65 = arith.constant 0 : index
      %122 = vector.load %arg4[%c0_64, %c0_65] : memref<1x32xf32, #tpu.memory_space<vmem>>, vector<1x32xf32>
      %123 = arith.truncf %120 : vector<8x16xf32> to vector<8x16xbf16>
      %cst_66 = arith.constant dense<0.000000e+00> : vector<8x32xf32>
      %124 = tpu.matmul %123, %121, %cst_66 {dimension_numbers = #tpu.dot_dimension_numbers<[1], [0], [0], [1], [0, 0, 1, 1], [], []>} : vector<8x16xbf16>, vector<16x32xbf16>, vector<8x32xf32> -> vector<8x32xf32>
      %125 = vector.broadcast %122 : vector<1x32xf32> to vector<8x32xf32>
      %126 = arith.addf %124, %125 : vector<8x32xf32>
      %c0_67 = arith.constant 0 : index
      %c0_68 = arith.constant 0 : index
      %127 = vector.load %arg20[%c0_67, %c0_68] : memref<8x32xf32, #tpu.memory_space<vmem>>, vector<8x32xf32>
      tpu.vector_store %arg20[%c0_67, %c0_68], %126 {strides = array<i32>} : memref<8x32xf32, #tpu.memory_space<vmem>>, vector<8x32xf32>,
    } else {
    }
    %c0 = arith.constant 0 : index
    %c0_1 = arith.constant 0 : index
    %3 = vector.load %arg20[%c0, %c0_1] : memref<8x32xf32, #tpu.memory_space<vmem>>, vector<8x32xf32>
    %c0_2 = arith.constant 0 : index
    %c0_3 = arith.constant 0 : index
    %c0_4 = arith.constant 0 : index
    %4 = vector.load %arg5[%c0_2, %c0_3, %c0_4] : memref<1x32x96xbf16, #tpu.memory_space<vmem>>, vector<1x32x96xbf16>
    %5 = vector.shape_cast %4 : vector<1x32x96xbf16> to vector<32x96xbf16>
    %c0_5 = arith.constant 0 : index
    %c0_6 = arith.constant 0 : index
    %c0_7 = arith.constant 0 : index
    %6 = vector.load %arg6[%c0_5, %c0_6, %c0_7] : memref<1x1x96xf32, #tpu.memory_space<vmem>>, vector<1x1x96xf32>
    %7 = vector.shape_cast %6 : vector<1x1x96xf32> to vector<1x96xf32>
    %8 = arith.truncf %3 : vector<8x32xf32> to vector<8x32xbf16>
    %cst = arith.constant dense<0.000000e+00> : vector<8x96xf32>
    %9 = tpu.matmul %8, %5, %cst {dimension_numbers = #tpu.dot_dimension_numbers<[1], [0], [0], [1], [0, 0, 1, 1], [], []>} : vector<8x32xbf16>, vector<32x96xbf16>, vector<8x96xf32> -> vector<8x96xf32>
    %10 = vector.broadcast %7 : vector<1x96xf32> to vector<8x96xf32>
    %11 = arith.addf %9, %10 : vector<8x96xf32>
    %12 = vector.extract_strided_slice %11 {offsets = [0, 0], sizes = [8, 32], strides = [1, 1]} : vector<8x96xf32> to vector<8x32xf32>
    %13 = vector.shape_cast %12 : vector<8x32xf32> to vector<8x4x8xf32>
    %14 = tpu.transpose %13, [1, 0, 2] : vector<8x4x8xf32> -> vector<4x8x8xf32>
    %15 = arith.truncf %14 : vector<4x8x8xf32> to vector<4x8x8xbf16>
    %16 = vector.extract_strided_slice %11 {offsets = [0, 32], sizes = [8, 32], strides = [1, 1]} : vector<8x96xf32> to vector<8x32xf32>
    %17 = vector.shape_cast %16 : vector<8x32xf32> to vector<8x4x8xf32>
    %18 = tpu.transpose %17, [1, 0, 2] : vector<8x4x8xf32> -> vector<4x8x8xf32>
    %19 = arith.truncf %18 : vector<4x8x8xf32> to vector<4x8x8xbf16>
    %20 = vector.extract_strided_slice %11 {offsets = [0, 64], sizes = [8, 32], strides = [1, 1]} : vector<8x96xf32> to vector<8x32xf32>
    %21 = vector.shape_cast %20 : vector<8x32xf32> to vector<8x4x8xf32>
    %22 = tpu.transpose %21, [1, 0, 2] : vector<8x4x8xf32> -> vector<4x8x8xf32>
    %23 = arith.truncf %22 : vector<4x8x8xf32> to vector<4x8x8xbf16>
    "tpu.trace_start"() <{level = 10 : i32, message = "hqd,hkd->hqk"}> : () -> ()
    %cst_8 = arith.constant dense<0.000000e+00> : vector<4x8x8xf32>
    %24 = tpu.matmul %15, %19, %cst_8 {dimension_numbers = #tpu.dot_dimension_numbers<[2], [2], [1], [1], [0, 0, 0, 1, 1, 1], [0], [0]>} : vector<4x8x8xbf16>, vector<4x8x8xbf16>, vector<4x8x8xf32> -> vector<4x8x8xf32>
    "tpu.trace_stop"() : () -> ()
    %cst_9 = arith.constant dense<0xFF800000> : vector<4x8xf32>
    %25 = vector.multi_reduction <maximumf>, %24, %cst_9 [2] : vector<4x8x8xf32> to vector<4x8xf32>
    %26 = vector.shape_cast %25 : vector<4x8xf32> to vector<4x8x1xf32>
    %27 = vector.broadcast %26 : vector<4x8x1xf32> to vector<4x8x8xf32>
    %28 = arith.subf %24, %27 : vector<4x8x8xf32>
    %29 = math.exp %28 : vector<4x8x8xf32>
    %cst_10 = arith.constant dense<0.000000e+00> : vector<4x8xf32>
    %30 = vector.multi_reduction <add>, %29, %cst_10 [2] : vector<4x8x8xf32> to vector<4x8xf32>
    %31 = vector.shape_cast %30 : vector<4x8xf32> to vector<4x8x1xf32>
    %32 = tpu.reciprocal %31 {approx = true} : vector<4x8x1xf32> -> vector<4x8x1xf32>
    %33 = vector.broadcast %32 : vector<4x8x1xf32> to vector<4x8x8xf32>
    %34 = arith.mulf %29, %33 : vector<4x8x8xf32>
    %35 = arith.truncf %34 : vector<4x8x8xf32> to vector<4x8x8xbf16>
    "tpu.trace_start"() <{level = 10 : i32, message = "hqk,hkd->hqd"}> : () -> ()
    %cst_11 = arith.constant dense<0.000000e+00> : vector<4x8x8xf32>
    %36 = tpu.matmul %35, %23, %cst_11 {dimension_numbers = #tpu.dot_dimension_numbers<[2], [1], [1], [2], [0, 0, 0, 1, 1, 2], [0], [0]>} : vector<4x8x8xbf16>, vector<4x8x8xbf16>, vector<4x8x8xf32> -> vector<4x8x8xf32>
    "tpu.trace_stop"() : () -> ()
    %37 = tpu.transpose %36, [1, 0, 2] : vector<4x8x8xf32> -> vector<8x4x8xf32>
    %38 = vector.shape_cast %37 : vector<8x4x8xf32> to vector<8x32xf32>
    %c0_12 = arith.constant 0 : index
    %c0_13 = arith.constant 0 : index
    %c0_14 = arith.constant 0 : index
    %39 = vector.load %arg7[%c0_12, %c0_13, %c0_14] : memref<1x32x32xbf16, #tpu.memory_space<vmem>>, vector<1x32x32xbf16>
    %40 = vector.shape_cast %39 : vector<1x32x32xbf16> to vector<32x32xbf16>
    %c0_15 = arith.constant 0 : index
    %c0_16 = arith.constant 0 : index
    %c0_17 = arith.constant 0 : index
    %41 = vector.load %arg8[%c0_15, %c0_16, %c0_17] : memref<1x1x32xf32, #tpu.memory_space<vmem>>, vector<1x1x32xf32>
    %42 = vector.shape_cast %41 : vector<1x1x32xf32> to vector<1x32xf32>
    %43 = arith.truncf %38 : vector<8x32xf32> to vector<8x32xbf16>
    %cst_18 = arith.constant dense<0.000000e+00> : vector<8x32xf32>
    %44 = tpu.matmul %43, %40, %cst_18 {dimension_numbers = #tpu.dot_dimension_numbers<[1], [0], [0], [1], [0, 0, 1, 1], [], []>} : vector<8x32xbf16>, vector<32x32xbf16>, vector<8x32xf32> -> vector<8x32xf32>
    %45 = vector.broadcast %42 : vector<1x32xf32> to vector<8x32xf32>
    %46 = arith.addf %44, %45 : vector<8x32xf32>
    %47 = arith.addf %3, %46 : vector<8x32xf32>
    %c0_19 = arith.constant 0 : index
    %c0_20 = arith.constant 0 : index
    %c0_21 = arith.constant 0 : index
    %48 = vector.load %arg13[%c0_19, %c0_20, %c0_21] : memref<1x1x32xf32, #tpu.memory_space<vmem>>, vector<1x1x32xf32>
    %49 = vector.shape_cast %48 : vector<1x1x32xf32> to vector<1x32xf32>
    %c0_22 = arith.constant 0 : index
    %c0_23 = arith.constant 0 : index
    %c0_24 = arith.constant 0 : index
    %50 = vector.load %arg14[%c0_22, %c0_23, %c0_24] : memref<1x1x32xf32, #tpu.memory_space<vmem>>, vector<1x1x32xf32>
    %51 = vector.shape_cast %50 : vector<1x1x32xf32> to vector<1x32xf32>
    %cst_25 = arith.constant dense<0.000000e+00> : vector<8xf32>
    %52 = vector.multi_reduction <add>, %47, %cst_25 [1] : vector<8x32xf32> to vector<8xf32>
    %53 = vector.shape_cast %52 : vector<8xf32> to vector<8x1xf32>
    %cst_26 = arith.constant 3.200000e+01 : f32
    %54 = vector.broadcast %cst_26 : f32 to vector<8x1xf32>
    %55 = arith.divf %53, %54 : vector<8x1xf32>
    %56 = vector.broadcast %55 : vector<8x1xf32> to vector<8x32xf32>
    %57 = arith.subf %47, %56 : vector<8x32xf32>
    %58 = arith.mulf %57, %57 : vector<8x32xf32>
    %cst_27 = arith.constant dense<0.000000e+00> : vector<8xf32>
    %59 = vector.multi_reduction <add>, %58, %cst_27 [1] : vector<8x32xf32> to vector<8xf32>
    %60 = vector.shape_cast %59 : vector<8xf32> to vector<8x1xf32>
    %cst_28 = arith.constant 3.200000e+01 : f32
    %61 = vector.broadcast %cst_28 : f32 to vector<8x1xf32>
    %62 = arith.divf %60, %61 : vector<8x1xf32>
    %cst_29 = arith.constant 9.99999974E-6 : f32
    %63 = vector.broadcast %cst_29 : f32 to vector<8x1xf32>
    %64 = arith.addf %62, %63 : vector<8x1xf32>
    %65 = math.rsqrt %64 : vector<8x1xf32>
    %66 = vector.broadcast %65 : vector<8x1xf32> to vector<8x32xf32>
    %67 = arith.mulf %57, %66 : vector<8x32xf32>
    %68 = vector.broadcast %49 : vector<1x32xf32> to vector<8x32xf32>
    %69 = arith.mulf %67, %68 : vector<8x32xf32>
    %70 = vector.broadcast %51 : vector<1x32xf32> to vector<8x32xf32>
    %71 = arith.addf %69, %70 : vector<8x32xf32>
    %c0_30 = arith.constant 0 : index
    %c0_31 = arith.constant 0 : index
    %c0_32 = arith.constant 0 : index
    %72 = vector.load %arg9[%c0_30, %c0_31, %c0_32] : memref<1x32x32xbf16, #tpu.memory_space<vmem>>, vector<1x32x32xbf16>
    %73 = vector.shape_cast %72 : vector<1x32x32xbf16> to vector<32x32xbf16>
    %c0_33 = arith.constant 0 : index
    %c0_34 = arith.constant 0 : index
    %c0_35 = arith.constant 0 : index
    %74 = vector.load %arg10[%c0_33, %c0_34, %c0_35] : memref<1x1x32xf32, #tpu.memory_space<vmem>>, vector<1x1x32xf32>
    %75 = vector.shape_cast %74 : vector<1x1x32xf32> to vector<1x32xf32>
    %76 = arith.truncf %71 : vector<8x32xf32> to vector<8x32xbf16>
    %cst_36 = arith.constant dense<0.000000e+00> : vector<8x32xf32>
    %77 = tpu.matmul %76, %73, %cst_36 {dimension_numbers = #tpu.dot_dimension_numbers<[1], [0], [0], [1], [0, 0, 1, 1], [], []>} : vector<8x32xbf16>, vector<32x32xbf16>, vector<8x32xf32> -> vector<8x32xf32>
    %78 = vector.broadcast %75 : vector<1x32xf32> to vector<8x32xf32>
    %79 = arith.addf %77, %78 : vector<8x32xf32>
    %cst_37 = arith.constant 0.000000e+00 : f32
    %80 = vector.broadcast %cst_37 : f32 to vector<8x32xf32>
    %81 = arith.maximumf %79, %80 : vector<8x32xf32>
    %c0_38 = arith.constant 0 : index
    %c0_39 = arith.constant 0 : index
    %c0_40 = arith.constant 0 : index
    %82 = vector.load %arg11[%c0_38, %c0_39, %c0_40] : memref<1x32x32xbf16, #tpu.memory_space<vmem>>, vector<1x32x32xbf16>
    %83 = vector.shape_cast %82 : vector<1x32x32xbf16> to vector<32x32xbf16>
    %c0_41 = arith.constant 0 : index
    %c0_42 = arith.constant 0 : index
    %c0_43 = arith.constant 0 : index
    %84 = vector.load %arg12[%c0_41, %c0_42, %c0_43] : memref<1x1x32xf32, #tpu.memory_space<vmem>>, vector<1x1x32xf32>
    %85 = vector.shape_cast %84 : vector<1x1x32xf32> to vector<1x32xf32>
    %86 = arith.truncf %81 : vector<8x32xf32> to vector<8x32xbf16>
    %cst_44 = arith.constant dense<0.000000e+00> : vector<8x32xf32>
    %87 = tpu.matmul %86, %83, %cst_44 {dimension_numbers = #tpu.dot_dimension_numbers<[1], [0], [0], [1], [0, 0, 1, 1], [], []>} : vector<8x32xbf16>, vector<32x32xbf16>, vector<8x32xf32> -> vector<8x32xf32>
    %88 = vector.broadcast %85 : vector<1x32xf32> to vector<8x32xf32>
    %89 = arith.addf %87, %88 : vector<8x32xf32>
    %90 = arith.addf %71, %89 : vector<8x32xf32>
    %c0_45 = arith.constant 0 : index
    %c0_46 = arith.constant 0 : index
    %c0_47 = arith.constant 0 : index
    %91 = vector.load %arg15[%c0_45, %c0_46, %c0_47] : memref<1x1x32xf32, #tpu.memory_space<vmem>>, vector<1x1x32xf32>
    %92 = vector.shape_cast %91 : vector<1x1x32xf32> to vector<1x32xf32>
    %c0_48 = arith.constant 0 : index
    %c0_49 = arith.constant 0 : index
    %c0_50 = arith.constant 0 : index
    %93 = vector.load %arg16[%c0_48, %c0_49, %c0_50] : memref<1x1x32xf32, #tpu.memory_space<vmem>>, vector<1x1x32xf32>
    %94 = vector.shape_cast %93 : vector<1x1x32xf32> to vector<1x32xf32>
    %cst_51 = arith.constant dense<0.000000e+00> : vector<8xf32>
    %95 = vector.multi_reduction <add>, %90, %cst_51 [1] : vector<8x32xf32> to vector<8xf32>
    %96 = vector.shape_cast %95 : vector<8xf32> to vector<8x1xf32>
    %cst_52 = arith.constant 3.200000e+01 : f32
    %97 = vector.broadcast %cst_52 : f32 to vector<8x1xf32>
    %98 = arith.divf %96, %97 : vector<8x1xf32>
    %99 = vector.broadcast %98 : vector<8x1xf32> to vector<8x32xf32>
    %100 = arith.subf %90, %99 : vector<8x32xf32>
    %101 = arith.mulf %100, %100 : vector<8x32xf32>
    %cst_53 = arith.constant dense<0.000000e+00> : vector<8xf32>
    %102 = vector.multi_reduction <add>, %101, %cst_53 [1] : vector<8x32xf32> to vector<8xf32>
    %103 = vector.shape_cast %102 : vector<8xf32> to vector<8x1xf32>
    %cst_54 = arith.constant 3.200000e+01 : f32
    %104 = vector.broadcast %cst_54 : f32 to vector<8x1xf32>
    %105 = arith.divf %103, %104 : vector<8x1xf32>
    %cst_55 = arith.constant 9.99999974E-6 : f32
    %106 = vector.broadcast %cst_55 : f32 to vector<8x1xf32>
    %107 = arith.addf %105, %106 : vector<8x1xf32>
    %108 = math.rsqrt %107 : vector<8x1xf32>
    %109 = vector.broadcast %108 : vector<8x1xf32> to vector<8x32xf32>
    %110 = arith.mulf %100, %109 : vector<8x32xf32>
    %111 = vector.broadcast %92 : vector<1x32xf32> to vector<8x32xf32>
    %112 = arith.mulf %110, %111 : vector<8x32xf32>
    %113 = vector.broadcast %94 : vector<1x32xf32> to vector<8x32xf32>
    %114 = arith.addf %112, %113 : vector<8x32xf32>
    %c0_56 = arith.constant 0 : index
    %c0_57 = arith.constant 0 : index
    %115 = vector.load %arg20[%c0_56, %c0_57] : memref<8x32xf32, #tpu.memory_space<vmem>>, vector<8x32xf32>
    tpu.vector_store %arg20[%c0_56, %c0_57], %114 {strides = array<i32>} : memref<8x32xf32, #tpu.memory_space<vmem>>, vector<8x32xf32>,
    %c1_i32 = arith.constant 1 : i32
    %116 = arith.cmpi eq, %arg1, %c1_i32 : i32
    %117 = arith.extui %116 : i1 to i32
    %c0_i32_58 = arith.constant 0 : i32
    %118 = arith.cmpi ne, %117, %c0_i32_58 : i32
    scf.if %118 {
      %c0_59 = arith.constant 0 : index
      %c0_60 = arith.constant 0 : index
      %119 = vector.load %arg17[%c0_59, %c0_60] : memref<32x128xbf16, #tpu.memory_space<vmem>>, vector<32x128xbf16>
      %c0_61 = arith.constant 0 : index
      %c0_62 = arith.constant 0 : index
      %120 = vector.load %arg18[%c0_61, %c0_62] : memref<1x128xf32, #tpu.memory_space<vmem>>, vector<1x128xf32>
      %121 = arith.truncf %114 : vector<8x32xf32> to vector<8x32xbf16>
      %cst_63 = arith.constant dense<0.000000e+00> : vector<8x128xf32>
      %122 = tpu.matmul %121, %119, %cst_63 {dimension_numbers = #tpu.dot_dimension_numbers<[1], [0], [0], [1], [0, 0, 1, 1], [], []>} : vector<8x32xbf16>, vector<32x128xbf16>, vector<8x128xf32> -> vector<8x128xf32>
      %123 = vector.broadcast %120 : vector<1x128xf32> to vector<8x128xf32>
      %124 = arith.addf %122, %123 : vector<8x128xf32>
      %c0_64 = arith.constant 0 : index
      %c0_65 = arith.constant 0 : index
      %c0_66 = arith.constant 0 : index
      %125 = vector.load %arg19[%c0_64, %c0_65, %c0_66] : memref<1x8x128xf32, #tpu.memory_space<vmem>>, vector<1x8x128xf32>
      %126 = vector.shape_cast %125 : vector<1x8x128xf32> to vector<8x128xf32>
      %127 = vector.shape_cast %124 : vector<8x128xf32> to vector<1x8x128xf32>
      tpu.vector_store %arg19[%c0_64, %c0_65, %c0_66], %127 {strides = array<i32>} : memref<1x8x128xf32, #tpu.memory_space<vmem>>, vector<1x8x128xf32>,
    } else {
    }
    return
  }
  func.func @transform_0(%arg0: i32, %arg1: i32) -> (i32, i32, i32) {
    %c0_i32 = arith.constant 0 : i32
    %c0_i32_0 = arith.constant 0 : i32
    %c0_i32_1 = arith.constant 0 : i32
    return %arg0, %c0_i32, %c0_i32_0 : i32, i32, i32
  }
  func.func @transform_1(%arg0: i32, %arg1: i32) -> (i32, i32) {
    %c0_i32 = arith.constant 0 : i32
    %c0_i32_0 = arith.constant 0 : i32
    %c0_i32_1 = arith.constant 0 : i32
    return %c0_i32, %c0_i32_0 : i32, i32
  }
  func.func @transform_2(%arg0: i32, %arg1: i32) -> (i32, i32) {
    %c0_i32 = arith.constant 0 : i32
    %c0_i32_0 = arith.constant 0 : i32
    %c0_i32_1 = arith.constant 0 : i32
    return %c0_i32, %c0_i32_0 : i32, i32
  }
  func.func @transform_3(%arg0: i32, %arg1: i32) -> (i32, i32, i32) {
    %c0_i32 = arith.constant 0 : i32
    %c0_i32_0 = arith.constant 0 : i32
    %c0_i32_1 = arith.constant 0 : i32
    return %arg1, %c0_i32, %c0_i32_0 : i32, i32, i32
  }
  func.func @transform_4(%arg0: i32, %arg1: i32) -> (i32, i32, i32) {
    %c0_i32 = arith.constant 0 : i32
    %c0_i32_0 = arith.constant 0 : i32
    %c0_i32_1 = arith.constant 0 : i32
    return %arg1, %c0_i32, %c0_i32_0 : i32, i32, i32
  }
  func.func @transform_5(%arg0: i32, %arg1: i32) -> (i32, i32, i32) {
    %c0_i32 = arith.constant 0 : i32
    %c0_i32_0 = arith.constant 0 : i32
    %c0_i32_1 = arith.constant 0 : i32
    return %arg1, %c0_i32, %c0_i32_0 : i32, i32, i32
  }
  func.func @transform_6(%arg0: i32, %arg1: i32) -> (i32, i32, i32) {
    %c0_i32 = arith.constant 0 : i32
    %c0_i32_0 = arith.constant 0 : i32
    %c0_i32_1 = arith.constant 0 : i32
    return %arg1, %c0_i32, %c0_i32_0 : i32, i32, i32
  }
  func.func @transform_7(%arg0: i32, %arg1: i32) -> (i32, i32, i32) {
    %c0_i32 = arith.constant 0 : i32
    %c0_i32_0 = arith.constant 0 : i32
    %c0_i32_1 = arith.constant 0 : i32
    return %arg1, %c0_i32, %c0_i32_0 : i32, i32, i32
  }
  func.func @transform_8(%arg0: i32, %arg1: i32) -> (i32, i32, i32) {
    %c0_i32 = arith.constant 0 : i32
    %c0_i32_0 = arith.constant 0 : i32
    %c0_i32_1 = arith.constant 0 : i32
    return %arg1, %c0_i32, %c0_i32_0 : i32, i32, i32
  }
  func.func @transform_9(%arg0: i32, %arg1: i32) -> (i32, i32, i32) {
    %c0_i32 = arith.constant 0 : i32
    %c0_i32_0 = arith.constant 0 : i32
    %c0_i32_1 = arith.constant 0 : i32
    return %arg1, %c0_i32, %c0_i32_0 : i32, i32, i32
  }
  func.func @transform_10(%arg0: i32, %arg1: i32) -> (i32, i32, i32) {
    %c0_i32 = arith.constant 0 : i32
    %c0_i32_0 = arith.constant 0 : i32
    %c0_i32_1 = arith.constant 0 : i32
    return %arg1, %c0_i32, %c0_i32_0 : i32, i32, i32
  }
  func.func @transform_11(%arg0: i32, %arg1: i32) -> (i32, i32, i32) {
    %c0_i32 = arith.constant 0 : i32
    %c0_i32_0 = arith.constant 0 : i32
    %c0_i32_1 = arith.constant 0 : i32
    return %arg1, %c0_i32, %c0_i32_0 : i32, i32, i32
  }
  func.func @transform_12(%arg0: i32, %arg1: i32) -> (i32, i32, i32) {
    %c0_i32 = arith.constant 0 : i32
    %c0_i32_0 = arith.constant 0 : i32
    %c0_i32_1 = arith.constant 0 : i32
    return %arg1, %c0_i32, %c0_i32_0 : i32, i32, i32
  }
  func.func @transform_13(%arg0: i32, %arg1: i32) -> (i32, i32, i32) {
    %c0_i32 = arith.constant 0 : i32
    %c0_i32_0 = arith.constant 0 : i32
    %c0_i32_1 = arith.constant 0 : i32
    return %arg1, %c0_i32, %c0_i32_0 : i32, i32, i32
  }
  func.func @transform_14(%arg0: i32, %arg1: i32) -> (i32, i32, i32) {
    %c0_i32 = arith.constant 0 : i32
    %c0_i32_0 = arith.constant 0 : i32
    %c0_i32_1 = arith.constant 0 : i32
    return %arg1, %c0_i32, %c0_i32_0 : i32, i32, i32
  }
  func.func @transform_15(%arg0: i32, %arg1: i32) -> (i32, i32) {
    %c0_i32 = arith.constant 0 : i32
    %c0_i32_0 = arith.constant 0 : i32
    %c0_i32_1 = arith.constant 0 : i32
    return %c0_i32, %c0_i32_0 : i32, i32
  }
  func.func @transform_16(%arg0: i32, %arg1: i32) -> (i32, i32) {
    %c0_i32 = arith.constant 0 : i32
    %c0_i32_0 = arith.constant 0 : i32
    %c0_i32_1 = arith.constant 0 : i32
    return %c0_i32, %c0_i32_0 : i32, i32
  }
  func.func @transform_17(%arg0: i32, %arg1: i32) -> (i32, i32, i32) {
    %c0_i32 = arith.constant 0 : i32
    %c0_i32_0 = arith.constant 0 : i32
    %c0_i32_1 = arith.constant 0 : i32
    return %arg0, %c0_i32, %c0_i32_0 : i32, i32, i32
  }
}

</mosaic_0001>

<bundles_post_ra>
// kernel: basic_transformer_forward.1
= control target key start
LH: loop header
LB: loop body
LE: loop exit
PB: predicated region body
PF: predicated region fallthrough
CT: control target
= control target key end

     0   :  { %s2856_s24 = smov 0   ;;  %s2858_s25 = smov 0   ;;  %s3225_s0 = inlined_call_operand.vmem [shape: f32[2,8,16], index: 0, kind: input, shape index: {}]   ;;  %s3226_s1 = inlined_call_operand.vmem [shape: bf16[16,32], index: 1, kind: input, shape index: {}]   ;;  %s3227_s2 = inlined_call_operand.vmem [shape: f32[1,32], index: 2, kind: input, shape index: {}]   ;;  %s3228_s3 = inlined_call_operand.vmem [shape: bf16[2,32,96], index: 3, kind: input, shape index: {}]   ;;  %s3229_s4 = inlined_call_operand.vmem [shape: f32[2,1,96], index: 4, kind: input, shape index: {}]   ;;  %s3230_s5 = inlined_call_operand.vmem [shape: bf16[2,32,32], index: 5, kind: input, shape index: {}]   ;;  %s3231_s6 = inlined_call_operand.vmem [shape: f32[2,1,32], index: 6, kind: input, shape index: {}]   ;;  %s3232_s7 = inlined_call_operand.vmem [shape: bf16[2,32,32], index: 7, kind: input, shape index: {}]   ;;  %s3233_s8 = inlined_call_operand.vmem [shape: f32[2,1,32], index: 8, kind: input, shape index: {}]   ;;  %s3234_s9 = inlined_call_operand.vmem [shape: bf16[2,32,32], index: 9, kind: input, shape index: {}]   ;;  %s3235_s10 = inlined_call_operand.vmem [shape: f32[2,1,32], index: 10, kind: input, shape index: {}]   ;;  %s3236_s11 = inlined_call_operand.vmem [shape: f32[2,1,32], index: 11, kind: input, shape index: {}]   ;;  %s3237_s12 = inlined_call_operand.vmem [shape: f32[2,1,32], index: 12, kind: input, shape index: {}]   ;;  %s3238_s13 = inlined_call_operand.vmem [shape: f32[2,1,32], index: 13, kind: input, shape index: {}]   ;;  %s3239_s14 = inlined_call_operand.vmem [shape: f32[2,1,32], index: 14, kind: input, shape index: {}]   ;;  %s3240_s15 = inlined_call_operand.vmem [shape: bf16[32,128], index: 15, kind: input, shape index: {}]   ;;  %s3241_s16 = inlined_call_operand.vmem [shape: f32[1,128], index: 16, kind: input, shape index: {}]   ;;  %s3242_s17 = inlined_call_operand.vmem [shape: f32[2,8,128], index: 17, kind: output, shape index: {}]  }
   0x1   :  { %3249 = sst [smem:[#allocation10_spill]] %s3225_s0  ;;  %s2860_s26 = smov 0  }
   0x2   :  { %3250 = sst [smem:[#allocation11_spill]] %s3226_s1  ;;  %s2862_s27 = smov 0  }
   0x3   :  { %3251 = sst [smem:[#allocation12_spill]] %s3227_s2  ;;  %s2864_s28 = smov 0  }
   0x4   :  { %3252 = sst [smem:[#allocation13_spill]] %s3228_s3 }
   0x5   :  { %3253 = sst [smem:[#allocation14_spill]] %s3230_s5 }
   0x6   :  { %3254 = sst [smem:[#allocation15_spill]] %s3232_s7 }
   0x7   :  { %3255 = sst [smem:[#allocation16_spill]] %s3234_s9 }
   0x8   :  { %3256 = sst [smem:[#allocation17_spill]] %s3240_s15 }
   0x9   :  { %3257 = sst [smem:[#allocation18_spill]] %s3241_s16 }
   0xa   :  { %3258 = sst [smem:[#allocation19_spill]] %s3242_s17 }
   0xb LB: > { %3259 = sst [smem:[#allocation3_spill]] %s2732_s24  ;;  %s36_s29 = sadd.s32 1, %s2740_s26  ;;  %s2748_s28 = sphi %s2864_s28, %s27_s28   ;;  %s2744_s27 = sphi %s2862_s27, %s3287_s27   ;;  %s2740_s26 = sphi %s2860_s26, %s3286_s26   ;;  %s2736_s25 = sphi %s2858_s25, %s3285_s25   ;;  %s2732_s24 = sphi %s2856_s24, %s3284_s24  }
   0xc   : > { %3260 = sst [smem:[#allocation4_spill]] %s2740_s26  ;;  %s39_s0 = sadd.s32 1, %s2744_s27 }
   0xd   : > { %3261 = sst [smem:[#allocation5_spill]] %s2744_s27  ;;  %p37_p0 = scmp.ge.s32.totalorder %s36_s29, 2 }
   0xe   : > { %3262 = sst [smem:[#allocation6_spill]] %s2748_s28  ;;  %p2434_p1 = scmp.ge.s32.totalorder %s2748_s28, 1 }
   0xf   : > { %p602_p2 = scmp.lt.s32.totalorder %s2748_s28, 5  ;;  %s3289_s29 = smov (%p37_p0, %s36_s29), 0 }
  0x10   : > { %3263 = sst [smem:[#allocation7_spill]] %s3289_s29  ;;  %s3291_s0 = smov (!%p37_p0, %s39_s0), %s2744_s27 }
  0x11   : > { %p603_p3 = pnand %p2434_p1, %p602_p2  ;;  %p41_p4 = scmp.ge.s32.totalorder %s3291_s0, 2 }
  0x13   : > { %s3293_s0 = smov (%p41_p4, %s3291_s0), 0  ;;  %606 = sbr.rel (%p603_p3) target bundleno = 3031 (0xbd7), region = 88 }
  0x14   : > { %3264 = sst [smem:[#allocation8_spill]] %s3293_s0 }
  0x18   : > { %p696_p5 = scmp.lt.s32.totalorder %s2736_s25, 1  ;;  %p700_p6 = scmp.lt.s32.totalorder %s2732_s24, 1 }
  0x19   : > { %s3265_s20 = sld [smem:[#allocation10_spill]] }
  0x1a   : > { %s3295_s25 = smov (!%p696_p5, %s2736_s25), 1  ;;  %s3266_s3 = sld [smem:[#allocation13_spill]] }
  0x1b   : > { %s2890_s30 = scalar_select %p700_p6, %s2732_s24, 1 }
  0x1c   : > { %s2435_s18 = sshll.u32 %s3295_s25, 3  ;;  %s3267_s5 = sld [smem:[#allocation14_spill]] }
  0x1d   : > { %s2492_s22 = sshll.u32 %s2890_s30, 4  ;;  %s3268_s7 = sld [smem:[#allocation15_spill]] }
  0x1e   : > { %s3270_s9 = sld [smem:[#allocation16_spill]]  ;;  %s734_s19 = scalar_lea.vmem %s3236_s11, %s2890_s30 }
  0x1f   : > { %s699_s21 = scalar_lea.vmem %s3265_s20, %s2435_s18  ;;  %s740_s23 = scalar_lea.vmem %s3238_s13, %s2890_s30 }
  0x20   : > { %s2899_s29 = scalar_lea.vmem %s3266_s3, %s2492_s22  ;;  %s3271_s15 = sld [smem:[#allocation19_spill]] }
  0x22   : > { %s2908_s2 = scalar_lea.vmem %s3267_s5, %s2492_s22  ;;  %s3272_s5 = sld [smem:[#allocation3_spill]] }
  0x23   : > { %s2917_s17 = scalar_lea.vmem %s3268_s7, %s2492_s22  ;;  %s737_s7 = scalar_lea.vmem %s3237_s12, %s2890_s30 }
  0x24   : > { %3269 = sst [smem:[#allocation9_spill]] %s2917_s17  ;;  %s2926_s28 = scalar_lea.vmem %s3270_s9, %s2492_s22 }
  0x25   : > { %s743_s22 = scalar_lea.vmem %s3239_s14, %s2890_s30 }
  0x26   : > { %s2951_s16 = scalar_lea.vmem %s3271_s15, %s2435_s18 }
  0x28   : > { %p2445_p7 = scmp.ne.s32.totalorder %s3272_s5, 0 }
  0x29   : > { %s3273_s1 = sld [smem:[#allocation11_spill]] (!%p2445_p7) }
  0x2a   : > { %752 = sbr.rel (%p2445_p7) target bundleno = 251 (0xfb), region = 92  ;;  %s3274_s17 = sld [smem:[#allocation12_spill]] (!%p2445_p7) }
  0x2f   : > { %v2679_v0 = vld [vmem:[%s3273_s1] sm:$0xff]   ;;  %v2750_v1 = vmov 0.0   ;;  %vm2751_vm0 = vmmov 0   ;;  %vm770_vm1 = vcmask 130048   ;;  %vm814_vm2 = vcmask 261120  }
  0x30   : > { %2529 = vmatprep.subr.bf16.mxu0 %v2750_v1  ;;  %v753_v2 = vld [vmem:[%s699_s21] sm:$0xff]  ;;  %2531 = vmatprep.mubr.msk.bf16.mxu0 %vm2751_vm0, %v2750_v1 }
  0x31   : > { %2530 = vmatpush3.bf16.msra.mxu0 %v2679_v0  ;;  %v757_v3 = vpack.c.bf16 %v753_v2, %v753_v2  ;;  %v2446_v4 = vld [vmem:[%s3274_s17] ss:$0 sm:$0xff] }
  0x34   : > { %2532 = vmatmul.mubr.msk.bf16.vlgmr.msra.gmra.mxu0 %vm770_vm1, %v757_v3 }
  0xf4   : > { %v808_v5 = vpop.f32.mrf.mxu0 }
  0xf5   : > { %v809_v6 = vadd.f32 %v2446_v4, %v808_v5 }
  0xf6   : > { %v2533_v7 = vpop.f32.mrf.mxu0 }
  0xf7   : > { %815 = vst.msk [vmem:[#allocation2] sm:$0xff] %vm814_vm2, %v809_v6 }
  0xf8   : > { %v811_v8 = vpop.f32.mrf.mxu0 }
  0xfa   : > { %v2534_v9 = vpop.f32.mrf.mxu0 }
  0xfb PF: > { %v2680_v10 = vld [vmem:[%s2899_s29 + $0x8] sm:$0xff]   ;;  %v2752_v11 = vmov 0.0   ;;  %v2681_v12 = vld [vmem:[%s2899_s29] sm:$0xff]   ;;  %vm2753_vm3 = vmmov 0   ;;  %vm841_vm4 = vcmask 261120   ;;  %s3275_s18 = scalar_lea.vmem %s3229_s4, %s2890_s30  ;;  %s2754_s21 = smov 104   ;;  %v900_v26 = vlaneseq }
  0xfc   : > { %2535 = vmatprep.subr.bf16.mxu0 %v2752_v11  ;;  %2543 = vmatprep.subr.bf16.mxu1 %v2752_v11  ;;  %v2449_v15 = vld [vmem:[%s3275_s18] ss:$0 sm:$0xff]  ;;  %s2755_s20 = smov 120   ;;  %s2756_s0 = smov 96   ;;  %v2758_v24 = vmov 1983009808  }
  0xfd   : > { %2536 = vmatpush3.bf16.msra.mxu0 %v2680_v10  ;;  %2539 = vmatprep.mubr.msk.bf16.mxu0 %vm2753_vm3, %v2752_v11  ;;  %s2757_s26 = smov 112   ;;  %v898_v25 = vunpack.c.l.s4 %v2758_v24  ;;  %v901_v28 = vshrl.u32 %v900_v26, 7  ;;  %v2759_v29 = vmov 1934713408   ;;  %vm1339_vm5 = vcmask 64512   ;;  %s2760_s27 = smov 64  }
  0xfe   : > { %v2966_v13 = vld [vmem:[#allocation2] sm:$0xff]  ;;  %2537 = vmatprep.subr.bf16.mxu0 %v2752_v11  ;;  %2545 = vmatprep.mubr.msk.bf16.mxu1 %vm2753_vm3, %v2752_v11  ;;  %v930_v30 = vunpack.c.l.s4 %v2759_v29  ;;  %vm1575_vm6 = vcmask 1043456   ;;  %s2762_s15 = smov 8   ;;  %s2763_s24 = smov 24   ;;  %vm1906_vm7 = vcmask 130048   ;;  %vm1908_vm8 = vcmask 195584  }
  0xff   : > { %v822_v14 = vpack.c.bf16 %v2966_v13, %v2966_v13  ;;  %v899_v27 = vunpack.c.0.s8 %v898_v25  ;;  %s3276_s3 = scalar_lea.vmem %s3231_s6, %s2890_s30  ;;  %s3277_s9 = sld [smem:[#allocation9_spill]] }
 0x100   : > { %v931_v36 = vunpack.c.0.s8 %v930_v30 }
 0x101   : > { %2538 = vmatpush3.bf16.msra.mxu0 %v2681_v12  ;;  %v3001_v33 = vsub.s32 %v899_v27, %v901_v28 }
 0x102   : > { %2549 = vmatprep.subr.bf16.mxu0 %v2752_v11  ;;  %v3011_v43 = vsub.s32 %v931_v36, %v901_v28 }
 0x104   : > { %2540 = vmatmul.mubr.msk.bf16.vlgmr.msra.gmra.mxu0 %vm841_vm4, %v822_v14 }
 0x105   : > { %2551 = vmatprep.mubr.msk.bf16.mxu0 %vm2753_vm3, %v2752_v11 }
 0x1c4   : > { %v879_v16 = vpop.f32.mrf.mxu0 }
 0x1c5   : > { %v2982_v17 = vadd.f32 %v2449_v15, %v879_v16 }
 0x1c6   : > { %v2541_v18 = vpop.f32.mrf.mxu0 }
 0x1c7   : > { %892 = vrot.lane.b32.xlu1 %v2982_v17, %s2754_s21  ;;  %886 = vrot.lane.b32.xlu0 %v2982_v17, %s2755_s20  ;;  %s3278_s20 = scalar_lea.vmem %s3233_s8, %s2890_s30 }
 0x1c8   : > { %v882_v19 = vpop.f32.mrf.mxu0 }
 0x1ca   : > { %v2542_v20 = vpop.f32.mrf.mxu0 }
 0x1cb   : > { %1035 = vrot.lane.b32.xlu1 %v2982_v17, %s2756_s0  ;;  %889 = vrot.lane.b32.xlu0 %v2982_v17, %s2757_s26  ;;  %s3279_s26 = scalar_lea.vmem %s3235_s10, %s2890_s30 }
 0x239   : > { %v2988_v21 = vpop.permute.xlu0 %886  ;;  %v2991_v22 = vpop.permute.xlu1 %892 }
 0x23a   : > { %1037 = vrot.lane.b32.xlu0 %v2988_v21, %s2756_s0  ;;  %v911_v34 = vcombine.low %v2988_v21, %v2991_v22  ;;  %v912_v35 = vcombine.high %v2988_v21, %v2991_v22 }
 0x23c   : > { %v919_v39 = vrot.slane %v911_v34, %v3001_v33  ;;  %v926_v40 = vrot.slane %v912_v35, %v3001_v33 }
 0x23d   : > { %v2993_v23 = vpop.permute.xlu0 %889  ;;  %v1036_v41 = vpop.permute.xlu1 %1035 }
 0x23e   : > { %1041 = vrot.lane.b32.xlu0 %v2991_v22, %s2756_s0  ;;  %1039 = vrot.lane.b32.xlu1 %v2993_v23, %s2756_s0  ;;  %v895_v31 = vcombine.low %v2982_v17, %v2993_v23  ;;  %v896_v32 = vcombine.high %v2982_v17, %v2993_v23 }
 0x240   : > { %v903_v37 = vrot.slane %v895_v31, %v3001_v33  ;;  %v910_v38 = vrot.slane %v896_v32, %v3001_v33 }
 0x242   : > { %v927_v44 = vcombine.low %v903_v37, %v919_v39  ;;  %v928_v45 = vcombine.high %v903_v37, %v919_v39  ;;  %v943_v46 = vcombine.low %v910_v38, %v926_v40  ;;  %v944_v47 = vcombine.high %v910_v38, %v926_v40 }
 0x244   : > { %v935_v54 = vrot.slane %v927_v44, %v3011_v43  ;;  %v942_v55 = vrot.slane %v928_v45, %v3011_v43  ;;  %v951_v56 = vrot.slane %v943_v46, %v3011_v43  ;;  %v958_v57 = vrot.slane %v944_v47, %v3011_v43 }
 0x246   : > { %v963_v2 = vcombine.low %v935_v54, %v942_v55  ;;  %v2453_v3 = vcombine.high %v935_v54, %v942_v55  ;;  %v979_v4 = vcombine.low %v951_v56, %v958_v57  ;;  %v2454_v5 = vcombine.high %v951_v56, %v958_v57 }
 0x248   : > { %v970_v16 = vrot.slane %v963_v2, %v3001_v33  ;;  %v978_v18 = vrot.slane %v2453_v3, %v3001_v33  ;;  %v986_v19 = vrot.slane %v979_v4, %v3001_v33  ;;  %v994_v20 = vrot.slane %v2454_v5, %v3001_v33 }
 0x24a   : > { %v995_v35 = vcombine.low %v970_v16, %v978_v18  ;;  %v1011_v36 = vcombine.low %v986_v19, %v994_v20 }
 0x24c   : > { %v1003_v44 = vrot.slane %v995_v35, %v3011_v43  ;;  %v1019_v45 = vrot.slane %v1011_v36, %v3011_v43 }
 0x2ac   : > { %v1038_v42 = vpop.permute.xlu0 %1037 }
 0x2b0   : > { %v1040_v48 = vpop.permute.xlu1 %1039  ;;  %v1042_v49 = vpop.permute.xlu0 %1041 }
 0x2b1   : > { %v1047_v50 = vcombine.low %v1036_v41, %v1040_v48  ;;  %v1048_v51 = vcombine.high %v1036_v41, %v1040_v48  ;;  %v1063_v52 = vcombine.low %v1038_v42, %v1042_v49  ;;  %v1064_v53 = vcombine.high %v1038_v42, %v1042_v49 }
 0x2b3   : > { %v1055_v58 = vrot.slane %v1047_v50, %v3001_v33  ;;  %v1062_v59 = vrot.slane %v1048_v51, %v3001_v33  ;;  %v1071_v60 = vrot.slane %v1063_v52, %v3001_v33  ;;  %v1078_v61 = vrot.slane %v1064_v53, %v3001_v33 }
 0x2b4   : > { %v996_v50 = vcombine.high %v970_v16, %v978_v18  ;;  %v1012_v51 = vcombine.high %v986_v19, %v994_v20  ;;  %v1027_v52 = vcombine.low %v1003_v44, %v1019_v45  ;;  %v1028_v53 = vcombine.high %v1003_v44, %v1019_v45 }
 0x2b5   : > { %v1079_v62 = vcombine.low %v1055_v58, %v1071_v60  ;;  %v1080_v63 = vcombine.high %v1055_v58, %v1071_v60  ;;  %v1095_v0 = vcombine.low %v1062_v59, %v1078_v61  ;;  %v1096_v1 = vcombine.high %v1062_v59, %v1078_v61 }
 0x2b6   : > { %v1031_v56 = vpack.c.bf16 %v1027_v52, %v1027_v52  ;;  %v1032_v57 = vpack.c.bf16 %v1028_v53, %v1028_v53  ;;  %v1010_v58 = vrot.slane %v996_v50, %v3011_v43  ;;  %v1026_v59 = vrot.slane %v1012_v51, %v3011_v43 }
 0x2b7   : > { %v1087_v6 = vrot.slane %v1079_v62, %v3011_v43  ;;  %v1094_v7 = vrot.slane %v1080_v63, %v3011_v43  ;;  %v1103_v8 = vrot.slane %v1095_v0, %v3011_v43  ;;  %v1110_v9 = vrot.slane %v1096_v1, %v3011_v43 }
 0x2b8   : > { %v1029_v62 = vcombine.low %v1010_v58, %v1026_v59  ;;  %v1030_v63 = vcombine.high %v1010_v58, %v1026_v59 }
 0x2b9   : > { %v1115_v10 = vcombine.low %v1087_v6, %v1094_v7  ;;  %v2455_v12 = vcombine.high %v1087_v6, %v1094_v7  ;;  %v1131_v14 = vcombine.low %v1103_v8, %v1110_v9  ;;  %v2456_v15 = vcombine.high %v1103_v8, %v1110_v9 }
 0x2ba   : > { %v1033_v0 = vpack.c.bf16 %v1029_v62, %v1029_v62  ;;  %v1034_v1 = vpack.c.bf16 %v1030_v63, %v1030_v63 }
 0x2bb   : > { %v1122_v24 = vrot.slane %v1115_v10, %v3001_v33  ;;  %v1130_v25 = vrot.slane %v2455_v12, %v3001_v33  ;;  %v1138_v26 = vrot.slane %v1131_v14, %v3001_v33  ;;  %v1146_v27 = vrot.slane %v2456_v15, %v3001_v33 }
 0x2bd   : > { %v1147_v28 = vcombine.low %v1122_v24, %v1130_v25  ;;  %v1163_v29 = vcombine.low %v1138_v26, %v1146_v27  ;;  %v1148_v30 = vcombine.high %v1122_v24, %v1130_v25  ;;  %v1164_v31 = vcombine.high %v1138_v26, %v1146_v27 }
 0x2bf   : > { %v1155_v32 = vrot.slane %v1147_v28, %v3011_v43  ;;  %v1171_v34 = vrot.slane %v1163_v29, %v3011_v43  ;;  %v1162_v39 = vrot.slane %v1148_v30, %v3011_v43  ;;  %v1178_v40 = vrot.slane %v1164_v31, %v3011_v43 }
 0x2c1   : > { %v1179_v37 = vcombine.low %v1155_v32, %v1171_v34  ;;  %v1180_v38 = vcombine.high %v1155_v32, %v1171_v34  ;;  %v1181_v48 = vcombine.low %v1162_v39, %v1178_v40  ;;  %v1182_v49 = vcombine.high %v1162_v39, %v1178_v40 }
 0x2c3   : > { %v1183_v41 = vpack.c.bf16 %v1179_v37, %v1179_v37  ;;  %v1184_v42 = vpack.c.bf16 %v1180_v38, %v1180_v38  ;;  %v1185_v54 = vpack.c.bf16 %v1181_v48, %v1181_v48  ;;  %v1186_v55 = vpack.c.bf16 %v1182_v49, %v1182_v49 }
 0x2c5   : > { %v1344_v46 = vsel %vm1339_vm5, %v1183_v41, 0  ;;  %v1390_v47 = vsel %vm1339_vm5, %v1184_v42, 0  ;;  %v1436_v60 = vsel %vm1339_vm5, %v1185_v54, 0  ;;  %v1482_v61 = vsel %vm1339_vm5, %v1186_v55, 0 }
 0x2c6   : > { %2544 = vmatpush3.bf16.xpose.msra.mxu1 %v1344_v46  ;;  %2550 = vmatpush3.bf16.xpose.msra.mxu0 %v1390_v47 }
 0x2c7   : > { %2555 = vmatprep.subr.bf16.mxu1 %v2752_v11  ;;  %2561 = vmatprep.subr.bf16.mxu0 %v2752_v11 }
 0x2cd   : > { %2546 = vmatmul.mubr.msk.bf16.vlgmr.msra.gmra.mxu1 %vm1339_vm5, %v1031_v56  ;;  %2552 = vmatmul.mubr.msk.bf16.vlgmr.msra.gmra.mxu0 %vm1339_vm5, %v1032_v57 }
 0x2ce   : > { %2556 = vmatpush3.bf16.xpose.msra.mxu1 %v1436_v60  ;;  %2562 = vmatpush3.bf16.xpose.msra.mxu0 %v1482_v61 }
 0x2cf   : > { %2557 = vmatprep.mubr.msk.bf16.mxu1 %vm2753_vm3, %v2752_v11  ;;  %2563 = vmatprep.mubr.msk.bf16.mxu0 %vm2753_vm3, %v2752_v11 }
 0x2d0   : > { %2567 = vmatprep.subr.bf16.mxu1 %v2752_v11  ;;  %2573 = vmatprep.subr.bf16.mxu0 %v2752_v11 }
 0x2d5   : > { %2558 = vmatmul.mubr.msk.bf16.vlgmr.msra.gmra.mxu1 %vm1339_vm5, %v1033_v0  ;;  %2564 = vmatmul.mubr.msk.bf16.vlgmr.msra.gmra.mxu0 %vm1339_vm5, %v1034_v1 }
 0x2d6   : > { %2569 = vmatprep.mubr.msk.bf16.mxu1 %vm2753_vm3, %v2752_v11  ;;  %2575 = vmatprep.mubr.msk.bf16.mxu0 %vm2753_vm3, %v2752_v11 }
 0x38d   : > { %v1380_v2 = vpop.f32.mrf.mxu1  ;;  %v1426_v3 = vpop.f32.mrf.mxu0 }
 0x38e   : > { %v1524_v4 = vsel %vm1339_vm5, %v1380_v2, -inf  ;;  %v1527_v5 = vsel %vm1339_vm5, %v1426_v3, -inf }
 0x38f   : > { %1525 = vmax.xlane.f32.xlu1 %v1524_v4  ;;  %v2547_v6 = vpop.f32.mrf.mxu1  ;;  %1528 = vmax.xlane.f32.xlu0 %v1527_v5  ;;  %v2553_v7 = vpop.f32.mrf.mxu0 }
 0x391   : > { %v1383_v8 = vpop.f32.mrf.mxu1  ;;  %v1429_v9 = vpop.f32.mrf.mxu0 }
 0x393   : > { %v2548_v10 = vpop.f32.mrf.mxu1  ;;  %v2554_v12 = vpop.f32.mrf.mxu0 }
 0x395   : > { %v1472_v14 = vpop.f32.mrf.mxu1  ;;  %v1518_v15 = vpop.f32.mrf.mxu0 }
 0x396   : > { %v1530_v16 = vsel %vm1339_vm5, %v1472_v14, -inf  ;;  %v1533_v18 = vsel %vm1339_vm5, %v1518_v15, -inf }
 0x397   : > { %v2559_v19 = vpop.f32.mrf.mxu1  ;;  %1531 = vmax.xlane.f32.xlu0 %v1530_v16  ;;  %1534 = vmax.xlane.f32.xlu1 %v1533_v18  ;;  %v2565_v20 = vpop.f32.mrf.mxu0 }
 0x399   : > { %v1475_v24 = vpop.f32.mrf.mxu1  ;;  %v1521_v25 = vpop.f32.mrf.mxu0 }
 0x39b   : > { %v2560_v26 = vpop.f32.mrf.mxu1  ;;  %v2566_v27 = vpop.f32.mrf.mxu0 }
 0x3a8   : > { %1189 = vrot.lane.b32.xlu1 %v2988_v21, %s2760_s27 }
 0x3ad   : > { %1187 = vrot.lane.b32.xlu0 %v2982_v17, %s2760_s27 }
 0x418   : > { %v1526_v28 = vpop.xlane.xlu1 %1525  ;;  %v1529_v29 = vpop.xlane.xlu0 %1528 }
 0x419   : > { %v1536_v30 = vsub.f32 %v1380_v2, %v1526_v28  ;;  %v1537_v31 = vsub.f32 %v1426_v3, %v1529_v29 }
 0x41b   : > { %v1540_v32 = vmul.f32 1.442695, %v1536_v30  ;;  %v1542_v34 = vmul.f32 1.442695, %v1537_v31 }
 0x41d   : > { %2688 = vpow2.f32 %v1540_v32 }
 0x41e   : > { %2690 = vpow2.f32 %v1542_v34 }
 0x420   : > { %v1535_v17 = vpop.xlane.xlu1 %1534  ;;  %v1532_v38 = vpop.xlane.xlu0 %1531 }
 0x421   : > { %v1539_v39 = vsub.f32 %v1518_v15, %v1535_v17  ;;  %v1538_v40 = vsub.f32 %v1472_v14, %v1532_v38 }
 0x423   : > { %v1546_v41 = vmul.f32 1.442695, %v1539_v39  ;;  %v1544_v42 = vmul.f32 1.442695, %v1538_v40 }
 0x424   : > { %v1190_v47 = vpop.permute.xlu1 %1189 }
 0x425   : > { %2692 = vpow2.f32 %v1546_v41 }
 0x426   : > { %2694 = vpow2.f32 %v1544_v42 }
 0x42a   : > { %v3067_v35 = vpop.eup %2688 }
 0x42b   : > { %v3069_v36 = vpop.eup %2690  ;;  %v1548_v37 = vsel %vm1339_vm5, %v3067_v35, 0.0 }
 0x42c   : > { %1549 = vadd.xlane.f32.xlu0 %v1548_v37  ;;  %v1551_v21 = vsel %vm1339_vm5, %v3069_v36, 0.0 }
 0x42d   : > { %1552 = vadd.xlane.f32.xlu1 %v1551_v21 }
 0x432   : > { %v3077_v44 = vpop.eup %2692 }
 0x433   : > { %v3079_v45 = vpop.eup %2694  ;;  %v1557_v46 = vsel %vm1339_vm5, %v3077_v44, 0.0 }
 0x43e   : > { %1191 = vrot.lane.b32.xlu1 %v2993_v23, %s2760_s27  ;;  %v1554_v23 = vsel %vm1339_vm5, %v3079_v45, 0.0 }
 0x442   : > { %1193 = vrot.lane.b32.xlu0 %v2991_v22, %s2760_s27  ;;  %v1188_v22 = vpop.permute.xlu0 %1187 }
 0x461   : > { %1558 = vadd.xlane.f32.xlu0 %v1557_v46 }
 0x462   : > { %1555 = vadd.xlane.f32.xlu1 %v1554_v23 }
 0x4b5   : > { %v1550_v48 = vpop.xlane.xlu0 %1549 }
 0x4b6   : > { %v1553_v49 = vpop.xlane.xlu1 %1552  ;;  %2696 = vrcp.f32 %v1550_v48 }
 0x4b7   : > { %2698 = vrcp.f32 %v1553_v49 }
 0x4b9   : > { %v1194_v50 = vpop.permute.xlu0 %1193 }
 0x4ba   : > { %v1215_v51 = vcombine.low %v1190_v47, %v1194_v50  ;;  %v1216_v52 = vcombine.high %v1190_v47, %v1194_v50  ;;  %v1192_v53 = vpop.permute.xlu1 %1191 }
 0x4bb   : > { %v1199_v54 = vcombine.low %v1188_v22, %v1192_v53  ;;  %v1200_v55 = vcombine.high %v1188_v22, %v1192_v53 }
 0x4bc   : > { %v1223_v56 = vrot.slane %v1215_v51, %v3001_v33  ;;  %v1230_v57 = vrot.slane %v1216_v52, %v3001_v33 }
 0x4bd   : > { %v1207_v58 = vrot.slane %v1199_v54, %v3001_v33  ;;  %v1214_v59 = vrot.slane %v1200_v55, %v3001_v33 }
 0x4bf   : > { %v1231_v60 = vcombine.low %v1207_v58, %v1223_v56  ;;  %v1232_v61 = vcombine.high %v1207_v58, %v1223_v56  ;;  %v1247_v62 = vcombine.low %v1214_v59, %v1230_v57  ;;  %v1248_v63 = vcombine.high %v1214_v59, %v1230_v57 }
 0x4c1   : > { %v1239_v0 = vrot.slane %v1231_v60, %v3011_v43  ;;  %v1246_v1 = vrot.slane %v1232_v61, %v3011_v43  ;;  %v1255_v2 = vrot.slane %v1247_v62, %v3011_v43  ;;  %v1262_v3 = vrot.slane %v1248_v63, %v3011_v43 }
 0x4c3   : > { %v1267_v4 = vcombine.low %v1239_v0, %v1246_v1  ;;  %v2457_v5 = vcombine.high %v1239_v0, %v1246_v1  ;;  %v1283_v6 = vcombine.low %v1255_v2, %v1262_v3  ;;  %v2458_v7 = vcombine.high %v1255_v2, %v1262_v3  ;;  %v2697_v19 = vpop.eup %2696 }
 0x4c4   : > { %v2699_v27 = vpop.eup %2698  ;;  %v1564_v37 = vmul.f32 %v2697_v19, %v3067_v35 }
 0x4c5   : > { %v1274_v8 = vrot.slane %v1267_v4, %v3001_v33  ;;  %v1282_v9 = vrot.slane %v2457_v5, %v3001_v33  ;;  %v1290_v10 = vrot.slane %v1283_v6, %v3001_v33  ;;  %v1298_v12 = vrot.slane %v2458_v7, %v3001_v33 }
 0x4c6   : > { %v1565_v21 = vmul.f32 %v2699_v27, %v3069_v36  ;;  %v1568_v41 = vpack.c.bf16 %v1564_v37, %v1564_v37 }
 0x4c7   : > { %v1299_v14 = vcombine.low %v1274_v8, %v1282_v9  ;;  %v1315_v15 = vcombine.low %v1290_v10, %v1298_v12  ;;  %v1300_v16 = vcombine.high %v1274_v8, %v1282_v9  ;;  %v1316_v18 = vcombine.high %v1290_v10, %v1298_v12 }
 0x4c8   : > { %v1569_v42 = vpack.c.bf16 %v1565_v21, %v1565_v21 }
 0x4c9   : > { %v1307_v20 = vrot.slane %v1299_v14, %v3011_v43  ;;  %v1323_v24 = vrot.slane %v1315_v15, %v3011_v43  ;;  %v1314_v25 = vrot.slane %v1300_v16, %v3011_v43  ;;  %v1330_v26 = vrot.slane %v1316_v18, %v3011_v43  ;;  %v2682_v15 = vld [vmem:[%s2908_s2 + $0x8] sm:$0xff]  }
 0x4cb   : > { %v1331_v28 = vcombine.low %v1307_v20, %v1323_v24  ;;  %v1332_v29 = vcombine.high %v1307_v20, %v1323_v24  ;;  %v1333_v30 = vcombine.low %v1314_v25, %v1330_v26  ;;  %v1334_v31 = vcombine.high %v1314_v25, %v1330_v26 }
 0x4cd   : > { %v1335_v32 = vpack.c.bf16 %v1331_v28, %v1331_v28  ;;  %v1336_v34 = vpack.c.bf16 %v1332_v29, %v1332_v29  ;;  %v1337_v39 = vpack.c.bf16 %v1333_v30, %v1333_v30  ;;  %v1338_v40 = vpack.c.bf16 %v1334_v31, %v1334_v31  ;;  %v2683_v29 = vld [vmem:[%s2908_s2] sm:$0xff]   ;;  %s2761_s2 = smov 16  }
 0x4cf   : > { %v1577_v17 = vsel %vm1575_vm6, %v1335_v32, 0  ;;  %v1623_v38 = vsel %vm1575_vm6, %v1336_v34, 0  ;;  %v1669_v35 = vsel %vm1575_vm6, %v1337_v39, 0  ;;  %v1715_v36 = vsel %vm1575_vm6, %v1338_v40, 0 }
 0x4d0   : > { %2568 = vmatpush3.bf16.msra.mxu1 %v1577_v17  ;;  %2574 = vmatpush3.bf16.msra.mxu0 %v1623_v38 }
 0x4d1   : > { %2579 = vmatprep.subr.bf16.mxu1 %v2752_v11  ;;  %2585 = vmatprep.subr.bf16.mxu0 %v2752_v11 }
 0x4d3   : > { %2570 = vmatmul.mubr.msk.bf16.vlgmr.msra.gmra.mxu1 %vm1339_vm5, %v1568_v41  ;;  %2576 = vmatmul.mubr.msk.bf16.vlgmr.msra.gmra.mxu0 %vm1339_vm5, %v1569_v42 }
 0x4d4   : > { %2580 = vmatpush3.bf16.msra.mxu1 %v1669_v35  ;;  %2586 = vmatpush3.bf16.msra.mxu0 %v1715_v36 }
 0x4d5   : > { %2581 = vmatprep.mubr.msk.bf16.mxu1 %vm2753_vm3, %v2752_v11  ;;  %2587 = vmatprep.mubr.msk.bf16.mxu0 %vm2753_vm3, %v2752_v11 }
 0x4d6   : > { %2591 = vmatprep.subr.bf16.mxu1 %v2752_v11  ;;  %2599 = vmatprep.subr.bf16.mxu0 %v2752_v11 }
 0x4ea   : > { %v1559_v46 = vpop.xlane.xlu0 %1558 }
 0x4eb   : > { %2700 = vrcp.f32 %v1559_v46  ;;  %v1556_v23 = vpop.xlane.xlu1 %1555 }
 0x4ec   : > { %2702 = vrcp.f32 %v1556_v23 }
 0x4f8   : > { %v2701_v22 = vpop.eup %2700 }
 0x4f9   : > { %v2703_v47 = vpop.eup %2702  ;;  %v1567_v48 = vmul.f32 %v2701_v22, %v3077_v44 }
 0x4fa   : > { %v1566_v49 = vmul.f32 %v2703_v47, %v3079_v45 }
 0x4fb   : > { %v1571_v50 = vpack.c.bf16 %v1567_v48, %v1567_v48 }
 0x4fc   : > { %v1570_v51 = vpack.c.bf16 %v1566_v49, %v1566_v49 }
 0x4fd   : > { %2588 = vmatmul.mubr.msk.bf16.vlgmr.msra.gmra.mxu0 %vm1339_vm5, %v1571_v50 }
 0x4fe   : > { %2582 = vmatmul.mubr.msk.bf16.vlgmr.msra.gmra.mxu1 %vm1339_vm5, %v1570_v51  ;;  %2603 = vmatprep.mubr.msk.bf16.mxu0 %vm2753_vm3, %v2752_v11  ;;  %v2469_v51 = vld [vmem:[%s3276_s3] ss:$0 sm:$0xff] }
 0x4ff   : > { %2595 = vmatprep.mubr.msk.bf16.mxu1 %vm2753_vm3, %v2752_v11  ;;  %2592 = vmatpush3.bf16.msra.mxu1 %v2682_v15 }
 0x500   : > { %2593 = vmatprep.subr.bf16.mxu1 %v2752_v11 }
 0x503   : > { %2594 = vmatpush3.bf16.msra.mxu1 %v2683_v29 }
 0x504   : > { %2607 = vmatprep.subr.bf16.mxu1 %v2752_v11 }
 0x593   : > { %v1613_v52 = vpop.f32.mrf.mxu1  ;;  %v1659_v53 = vpop.f32.mrf.mxu0 }
 0x595   : > { %v2571_v54 = vpop.f32.mrf.mxu1  ;;  %v2577_v55 = vpop.f32.mrf.mxu0 }
 0x597   : > { %v1616_v56 = vpop.f32.mrf.mxu1  ;;  %v1662_v44 = vpop.f32.mrf.mxu0 }
 0x599   : > { %v2572_v57 = vpop.f32.mrf.mxu1  ;;  %v2578_v45 = vpop.f32.mrf.mxu0 }
 0x5bd   : > { %v1751_v58 = vpop.f32.mrf.mxu0 }
 0x5be   : > { %v1705_v59 = vpop.f32.mrf.mxu1  ;;  %v1773_v60 = vcombine.low %v1659_v53, %v1751_v58  ;;  %v1774_v61 = vcombine.high %v1659_v53, %v1751_v58 }
 0x5bf   : > { %v1757_v62 = vcombine.low %v1613_v52, %v1705_v59  ;;  %v1758_v63 = vcombine.high %v1613_v52, %v1705_v59  ;;  %v2589_v0 = vpop.f32.mrf.mxu0 }
 0x5c0   : > { %v1781_v1 = vrot.slane %v1773_v60, %v3001_v33  ;;  %v1788_v2 = vrot.slane %v1774_v61, %v3001_v33  ;;  %v2583_v3 = vpop.f32.mrf.mxu1 }
 0x5c1   : > { %v1765_v4 = vrot.slane %v1757_v62, %v3001_v33  ;;  %v1772_v5 = vrot.slane %v1758_v63, %v3001_v33  ;;  %v1754_v6 = vpop.f32.mrf.mxu0  ;;  %v2684_v62 = vld [vmem:[%s3277_s9 + $0x8] sm:$0xff]   ;;  %v2685_v63 = vld [vmem:[%s3277_s9] sm:$0xff]  }
 0x5c2   : > { %v1708_v7 = vpop.f32.mrf.mxu1  ;;  %2600 = vmatpush3.bf16.msra.mxu0 %v2684_v62  ;;  %v2473_v3 = vld [vmem:[%s734_s19] ss:$0 sm:$0xff] }
 0x5c3   : > { %v1789_v8 = vcombine.low %v1765_v4, %v1781_v1  ;;  %v1790_v9 = vcombine.high %v1765_v4, %v1781_v1  ;;  %v1805_v10 = vcombine.low %v1772_v5, %v1788_v2  ;;  %v1806_v12 = vcombine.high %v1772_v5, %v1788_v2  ;;  %v2590_v14 = vpop.f32.mrf.mxu0  ;;  %2601 = vmatprep.subr.bf16.mxu0 %v2752_v11  ;;  %v2474_v5 = vld [vmem:[%s737_s7] ss:$0 sm:$0xff] }
 0x5c4   : > { %v2584_v16 = vpop.f32.mrf.mxu1 }
 0x5c5   : > { %v1797_v18 = vrot.slane %v1789_v8, %v3011_v43  ;;  %v1804_v19 = vrot.slane %v1790_v9, %v3011_v43  ;;  %v1813_v20 = vrot.slane %v1805_v10, %v3011_v43  ;;  %v1820_v24 = vrot.slane %v1806_v12, %v3011_v43  ;;  %v2686_v9 = vld [vmem:[%s2926_s28 + $0x8] sm:$0xff]   ;;  %v2687_v10 = vld [vmem:[%s2926_s28] sm:$0xff]  }
 0x5c6   : > { %2602 = vmatpush3.bf16.msra.mxu0 %v2685_v63  ;;  %v2475_v12 = vld [vmem:[%s3278_s20] ss:$0 sm:$0xff] }
 0x5c7   : > { %v1825_v25 = vcombine.low %v1797_v18, %v1804_v19  ;;  %v2467_v26 = vcombine.high %v1797_v18, %v1804_v19  ;;  %v1841_v27 = vcombine.low %v1813_v20, %v1820_v24  ;;  %v2468_v28 = vcombine.high %v1813_v20, %v1820_v24 }
 0x5c9   : > { %v1832_v30 = vrot.slane %v1825_v25, %v3001_v33  ;;  %v1840_v31 = vrot.slane %v2467_v26, %v3001_v33  ;;  %v1848_v32 = vrot.slane %v1841_v27, %v3001_v33  ;;  %v1856_v34 = vrot.slane %v2468_v28, %v3001_v33 }
 0x5cb   : > { %v1858_v37 = vcombine.high %v1832_v30, %v1840_v31  ;;  %v1874_v21 = vcombine.high %v1848_v32, %v1856_v34  ;;  %v1857_v17 = vcombine.low %v1832_v30, %v1840_v31  ;;  %v1873_v38 = vcombine.low %v1848_v32, %v1856_v34 }
 0x5cd   : > { %v1872_v39 = vrot.slane %v1858_v37, %v3011_v43  ;;  %v1888_v40 = vrot.slane %v1874_v21, %v3011_v43  ;;  %v1865_v41 = vrot.slane %v1857_v17, %v3011_v43  ;;  %v1881_v42 = vrot.slane %v1873_v38, %v3011_v43 }
 0x5cf   : > { %v1891_v35 = vcombine.low %v1872_v39, %v1888_v40  ;;  %v1890_v36 = vcombine.high %v1865_v41, %v1881_v42  ;;  %v1889_v46 = vcombine.low %v1865_v41, %v1881_v42  ;;  %v1892_v33 = vcombine.high %v1872_v39, %v1888_v40  ;;  %v2483_v42 = vld [vmem:[%s740_s23] ss:$0 sm:$0xff] }
 0x5d1   : > { %1898 = vrot.lane.b32.xlu1 %v1891_v35, %s2761_s2  ;;  %1894 = vrot.lane.b32.xlu0 %v1890_v36, %s2762_s15  ;;  %v2484_v36 = vld [vmem:[%s743_s22] ss:$0 sm:$0xff] }
 0x5d5   : > { %1902 = vrot.lane.b32.xlu1 %v1892_v33, %s2763_s24  ;;  %s3280_s24 = sld [smem:[#allocation3_spill]] }
 0x5db   : > { %p2485_p8 = scmp.ne.s32.totalorder %s3280_s24, 1 }
 0x5dc   : > { %s3281_s3 = sld [smem:[#allocation17_spill]] (!%p2485_p8) }
 0x5dd   : > { %s3282_s17 = sld [smem:[#allocation18_spill]] (!%p2485_p8) }
 0x643   : > { %v1899_v23 = vpop.permute.xlu1 %1898  ;;  %v1895_v22 = vpop.permute.xlu0 %1894 }
 0x644   : > { %v1905_v47 = vsel %vm1339_vm5, %v1889_v46, %v1895_v22 }
 0x645   : > { %v1907_v49 = vsel %vm1906_vm7, %v1905_v47, %v1899_v23 }
 0x647   : > { %v1903_v48 = vpop.permute.xlu1 %1902 }
 0x648   : > { %v1909_v43 = vsel %vm1908_vm8, %v1907_v49, %v1903_v48 }
 0x649   : > { %v1915_v50 = vpack.c.bf16 %v1909_v43, %v1909_v43 }
 0x64b   : > { %2596 = vmatmul.mubr.msk.bf16.vlgmr.msra.gmra.mxu1 %vm841_vm4, %v1915_v50 }
 0x64c   : > { %2611 = vmatprep.mubr.msk.bf16.mxu1 %vm2753_vm3, %v2752_v11  ;;  %2608 = vmatpush3.bf16.msra.mxu1 %v2686_v9 }
 0x64d   : > { %2609 = vmatprep.subr.bf16.mxu1 %v2752_v11  ;;  %v2479_v11 = vld [vmem:[%s3279_s26] ss:$0 sm:$0xff] }
 0x650   : > { %2610 = vmatpush3.bf16.msra.mxu1 %v2687_v10 }
 0x70b   : > { %v1971_v52 = vpop.f32.mrf.mxu1 }
 0x70c   : > { %v1972_v53 = vadd.f32 %v2469_v51, %v1971_v52 }
 0x70d   : > { %v2597_v54 = vpop.f32.mrf.mxu1 }
 0x70e   : > { %v1977_v55 = vadd.f32 %v1972_v53, %v2966_v13 }
 0x70f   : > { %v1974_v56 = vpop.f32.mrf.mxu1 }
 0x710   : > { %v1980_v44 = vsel %vm841_vm4, %v1977_v55, 0.0 }
 0x711   : > { %1981 = vadd.xlane.f32.xlu0 %v1980_v44  ;;  %v2598_v57 = vpop.f32.mrf.mxu1 }
 0x79a   : > { %v1982_v45 = vpop.xlane.xlu0 %1981 }
 0x79b   : > { %v1984_v58 = vmul.f32 0.03125, %v1982_v45 }
 0x79d   : > { %v1985_v59 = vsub.f32 %v1977_v55, %v1984_v58 }
 0x79f   : > { %v1986_v60 = vmul.f32 %v1985_v59, %v1985_v59 }
 0x7a1   : > { %v1987_v61 = vsel %vm841_vm4, %v1986_v60, 0.0 }
 0x7a2   : > { %1988 = vadd.xlane.f32.xlu1 %v1987_v61 }
 0x82b   : > { %v1989_v13 = vpop.xlane.xlu1 %1988 }
 0x82c   : > { %v1990_v0 = vmul.f32 0.03125, %v1989_v13 }
 0x82e   : > { %v1991_v1 = vadd.f32 1e-05, %v1990_v0 }
 0x830   : > { %2704 = vrsqrt.f32 %v1991_v1 }
 0x83d   : > { %v2705_v2 = vpop.eup %2704 }
 0x83e   : > { %v1993_v4 = vmul.f32 %v2705_v2, %v1985_v59 }
 0x840   : > { %v2000_v6 = vmul.f32 %v2473_v3, %v1993_v4 }
 0x842   : > { %v2007_v7 = vadd.f32 %v2474_v5, %v2000_v6 }
 0x844   : > { %v2013_v8 = vpack.c.bf16 %v2007_v7, %v2007_v7 }
 0x846   : > { %2604 = vmatmul.mubr.msk.bf16.vlgmr.msra.gmra.mxu0 %vm841_vm4, %v2013_v8 }
 0x906   : > { %v2069_v14 = vpop.f32.mrf.mxu0 }
 0x907   : > { %v2070_v15 = vadd.f32 %v2475_v12, %v2069_v14 }
 0x908   : > { %v2605_v16 = vpop.f32.mrf.mxu0 }
 0x909   : > { %v2075_v18 = vmax.f32 %v2070_v15, 0.0 }
 0x90a   : > { %v2072_v19 = vpop.f32.mrf.mxu0 }
 0x90b   : > { %v2081_v20 = vpack.c.bf16 %v2075_v18, %v2075_v18 }
 0x90c   : > { %v2606_v24 = vpop.f32.mrf.mxu0 }
 0x90d   : > { %2612 = vmatmul.mubr.msk.bf16.vlgmr.msra.gmra.mxu1 %vm841_vm4, %v2081_v20 }
 0x9cd   : > { %v2137_v25 = vpop.f32.mrf.mxu1 }
 0x9ce   : > { %v2138_v26 = vadd.f32 %v2479_v11, %v2137_v25 }
 0x9cf   : > { %v2613_v27 = vpop.f32.mrf.mxu1 }
 0x9d0   : > { %v2143_v28 = vadd.f32 %v2138_v26, %v2007_v7 }
 0x9d1   : > { %v2140_v29 = vpop.f32.mrf.mxu1 }
 0x9d2   : > { %v2146_v30 = vsel %vm841_vm4, %v2143_v28, 0.0 }
 0x9d3   : > { %2147 = vadd.xlane.f32.xlu0 %v2146_v30  ;;  %v2614_v31 = vpop.f32.mrf.mxu1 }
 0xa5c   : > { %v2148_v32 = vpop.xlane.xlu0 %2147 }
 0xa5d   : > { %v2149_v34 = vmul.f32 0.03125, %v2148_v32 }
 0xa5f   : > { %v2150_v37 = vsub.f32 %v2143_v28, %v2149_v34 }
 0xa61   : > { %v2151_v21 = vmul.f32 %v2150_v37, %v2150_v37 }
 0xa63   : > { %v2152_v17 = vsel %vm841_vm4, %v2151_v21, 0.0 }
 0xa64   : > { %2153 = vadd.xlane.f32.xlu0 %v2152_v17 }
 0xaed   : > { %v2154_v38 = vpop.xlane.xlu0 %2153 }
 0xaee   : > { %v2155_v39 = vmul.f32 0.03125, %v2154_v38 }
 0xaf0   : > { %v2156_v40 = vadd.f32 1e-05, %v2155_v39 }
 0xaf2   : > { %2706 = vrsqrt.f32 %v2156_v40 }
 0xaff   : > { %v2707_v41 = vpop.eup %2706 }
 0xb00   : > { %v2158_v35 = vmul.f32 %v2707_v41, %v2150_v37 }
 0xb02   : > { %v2165_v46 = vmul.f32 %v2483_v42, %v2158_v35  ;;  %2177 = sbr.rel (%p2485_p8) target bundleno = 3031 (0xbd7), region = 96 }
 0xb04   : > { %v2172_v33 = vadd.f32 %v2484_v36, %v2165_v46 }
 0xb06   : > { %2173 = vst.msk [vmem:[#allocation2] sm:$0xff] %vm841_vm4, %v2172_v33 }
 0xb07   : > { %v2708_v23 = vld [vmem:[%s3281_s3 + $0x8] sm:$0xff]   ;;  %v2764_v22 = vmov 0.0   ;;  %v2709_v47 = vld [vmem:[%s3281_s3] sm:$0xff]   ;;  %vm2765_vm9 = vmmov 0   ;;  %v2183_v48 = vpack.c.bf16 %v2172_v33, %v2172_v33 }
 0xb08   : > { %2615 = vmatprep.subr.bf16.mxu0 %v2764_v22  ;;  %2619 = vmatprep.mubr.msk.bf16.mxu0 %vm2765_vm9, %v2764_v22  ;;  %v2486_v49 = vld [vmem:[%s3282_s17] ss:$0 sm:$0xff] }
 0xb09   : > { %2616 = vmatpush3.bf16.msra.mxu0 %v2708_v23 }
 0xb0a   : > { %2617 = vmatprep.subr.bf16.mxu0 %v2764_v22 }
 0xb0d   : > { %2618 = vmatpush3.bf16.msra.mxu0 %v2709_v47 }
 0xb10   : > { %2620 = vmatmul.mubr.msk.bf16.vlgmr.msra.gmra.mxu0 %vm841_vm4, %v2183_v48 }
 0xbd0   : > { %v2239_v43 = vpop.f32.mrf.mxu0 }
 0xbd1   : > { %v2240_v50 = vadd.f32 %v2486_v49, %v2239_v43 }
 0xbd2   : > { %v2621_v51 = vpop.f32.mrf.mxu0 }
 0xbd3   : > { %2245 = vst [vmem:[%s2951_s16] sm:$0xff] %v2240_v50 }
 0xbd4   : > { %v2242_v52 = vpop.f32.mrf.mxu0 }
 0xbd6   : > { %v2622_v53 = vpop.f32.mrf.mxu0 }
 0xbd7 PF: > { %s3283_s5 = sld [smem:[#allocation6_spill]] }
 0xbd8   : > { %s3284_s24 = sld [smem:[#allocation4_spill]] }
 0xbd9   : > { %s3285_s25 = sld [smem:[#allocation5_spill]] }
 0xbda   : > { %s3286_s26 = sld [smem:[#allocation7_spill]] }
 0xbdb   : > { %s3287_s27 = sld [smem:[#allocation8_spill]] }
 0xbdd   : > { %s27_s28 = sadd.s32 1, %s3283_s5  }
 0xbde   : > { %p24_p9 = scmp.ge.s32.totalorder %s27_s28, 6  }
 0xbe0   :  { %26 = sbr.rel (!%p24_p9) target bundleno = 11 (0xb), region = 162 }

</bundles_post_ra>
